<compile_context>
chip_gen: v7x
topology: tpu7x:2x2x1
jax: 0.10.0
libtpu: 0.0.40
codegen_flags: <defaults>
</compile_context>

<pallas_src>
import functools

import jax
import jax.numpy as jnp
from jax import lax
from jax.experimental import pallas as pl
from jax.experimental.pallas import tpu as pltpu

# Leave headroom: v7x has only 64 MiB physical VMEM, so never claim all of it.
_VMEM_LIMIT = 48 * 1024 * 1024


def _round_up(x, m):
    return ((x + m - 1) // m) * m


def _plan_rows(hw, raster_rows=64, shade_rows=512):
    """Pick flattened-image row padding and per-kernel spatial tile heights.

    "rows" are 128-pixel vreg rows of the flattened HW image.  Both the raster
    tile and the (larger) shade tile must divide rows_pad, and shade_rows is a
    multiple of raster_rows so a single padding satisfies both.
    """
    rows = -(-hw // 128)
    r_raster = min(raster_rows, rows)
    if rows > shade_rows:
        r_shade = shade_rows
        rows_pad = _round_up(rows, shade_rows)
    else:
        rows_pad = _round_up(rows, r_raster)
        r_shade = rows_pad
    return rows_pad, r_raster, r_shade


# ----------------------------------------------------------------------------
# 1) vertex transform + projection (VPU, vertices on lanes)
# ----------------------------------------------------------------------------
def _vertex_kernel(mvp_ref, v_ref, o_ref, *, h, w):
    b = pl.program_id(0)
    x = v_ref[0:1, :]
    y = v_ref[1:2, :]
    z = v_ref[2:3, :]

    def clip_row(r):
        return (mvp_ref[b, r, 0] * x + mvp_ref[b, r, 1] * y
                + mvp_ref[b, r, 2] * z + mvp_ref[b, r, 3])

    cx, cy, cz, cw = clip_row(0), clip_row(1), clip_row(2), clip_row(3)
    # guard w ~ 0 preserving its sign. TODO(synk): no near-plane clipping.
    cw = jnp.where(jnp.abs(cw) < 1e-6, jnp.where(cw < 0, -1e-6, 1e-6), cw)
    inv_w = pl.reciprocal(cw, approx=True)        # EUP slot, essentially free
    o_ref[0:1, :] = (cx * inv_w * 0.5 + 0.5) * w  # direct row stores, no concat
    o_ref[1:2, :] = (cy * inv_w * 0.5 + 0.5) * h
    o_ref[2:3, :] = cz * inv_w


def vertex_transform(v_lanes, mvp, h, w):
    # v_lanes: [3, Nvp] (vertices on lanes)   mvp: [B, 4, 4]
    B = mvp.shape[0]
    nvp = v_lanes.shape[1]
    return pl.pallas_call(
        functools.partial(_vertex_kernel, h=float(h), w=float(w)),
        out_shape=jax.ShapeDtypeStruct((B, 3, nvp), jnp.float32),
        grid=(B,),
        in_specs=[
            pl.BlockSpec(memory_space=pltpu.MemorySpace.SMEM),
            pl.BlockSpec((3, nvp), lambda b: (0, 0)),
        ],
        out_specs=pl.BlockSpec((None, 3, nvp), lambda b: (b, 0, 0)),
        compiler_params=pltpu.CompilerParams(
            dimension_semantics=("parallel",),
            vmem_limit_bytes=_VMEM_LIMIT),
    )(mvp, v_lanes)


# ----------------------------------------------------------------------------
# 2) rasterizer (replaces dr.rasterize)
#    grid = (B, spatial_tiles, triangle_chunks); per-tile bbox cull; z plane is
#    VMEM scratch; outputs = winning triangle id + its (u, v) barycentrics.
# ----------------------------------------------------------------------------
def _rasterize_kernel(pxy_ref, tri_ref, id_ref, u_ref, v_ref, z_ref,
                      *, tri_block, w, rows_tile):
    s = pl.program_id(1)
    c = pl.program_id(2)

    @pl.when(c == 0)
    def _init():
        z_ref[...] = jnp.full(z_ref.shape, 1e30, z_ref.dtype)
        id_ref[...] = jnp.zeros(id_ref.shape, id_ref.dtype)
        u_ref[...] = jnp.zeros(u_ref.shape, u_ref.dtype)
        v_ref[...] = jnp.zeros(v_ref.shape, v_ref.dtype)

    px = pxy_ref[0]                       # [rows_tile, 128] precomputed centers
    py = pxy_ref[1]

    # y-extent of this spatial tile (a tile spans all x in row-major order);
    # slightly widened so pixel centers on the boundary are never culled.
    tile_px = rows_tile * 128
    ty0 = ((s * tile_px) // w).astype(jnp.float32)
    ty1 = ((s * tile_px + tile_px - 1) // w).astype(jnp.float32) + 1.0
    t_base = c * tri_block

    # TODO(synk): glue-side per-tile triangle binning via scalar prefetch and
    # MXU offload of the edge-equation evaluation are the next raster wins.
    @pl.loop(0, tri_block)
    def _tri(j):
        x0 = tri_ref[0, 0, j]; y0 = tri_ref[0, 1, j]; z0 = tri_ref[0, 2, j]
        x1 = tri_ref[0, 3, j]; y1 = tri_ref[0, 4, j]; z1 = tri_ref[0, 5, j]
        x2 = tri_ref[0, 6, j]; y2 = tri_ref[0, 7, j]; z2 = tri_ref[0, 8, j]

        # scalar cull: degenerate / zero-padded / outside this tile rectangle
        d = (x1 - x0) * (y2 - y0) - (x2 - x0) * (y1 - y0)
        xmin = jnp.minimum(jnp.minimum(x0, x1), x2)
        xmax = jnp.maximum(jnp.maximum(x0, x1), x2)
        ymin = jnp.minimum(jnp.minimum(y0, y1), y2)
        ymax = jnp.maximum(jnp.maximum(y0, y1), y2)
        hit = ((jnp.abs(d) > 1e-8)
               & (xmax >= 0.0) & (xmin <= float(w))
               & (ymax >= ty0) & (ymin <= ty1))

        @pl.when(hit)
        def _():
            inv_d = 1.0 / d
            l0 = ((y1 - y2) * (px - x2) + (x2 - x1) * (py - y2)) * inv_d
            l1 = ((y2 - y0) * (px - x2) + (x0 - x2) * (py - y2)) * inv_d
            l2 = 1.0 - l0 - l1
            zp = l0 * z0 + l1 * z1 + l2 * z2
            win = ((l0 >= 0.0) & (l1 >= 0.0) & (l2 >= 0.0)
                   & (zp < z_ref[...]))
            z_ref[...] = jnp.where(win, zp, z_ref[...])
            id_ref[...] = jnp.where(win, t_base + j + 1, id_ref[...])  # 0 == bg
            u_ref[...] = jnp.where(win, l0, u_ref[...])
            v_ref[...] = jnp.where(win, l1, v_ref[...])


def rasterize(tri_ct, pxy, w, tri_block, rows_tile):
    # tri_ct: [B, 9, Nf_pad] rows = (x0,y0,z0, x1,y1,z1, x2,y2,z2)
    # pxy:    [2, rows_pad, 128] precomputed pixel centers (px, py)
    B, _, nf_pad = tri_ct.shape
    rows_pad = pxy.shape[1]
    n_sp = rows_pad // rows_tile
    n_chunks = nf_pad // tri_block
    plane = lambda dt: jax.ShapeDtypeStruct((B, rows_pad, 128), dt)
    out_spec = pl.BlockSpec((None, rows_tile, 128), lambda b, s, c: (b, s, 0))
    return pl.pallas_call(
        functools.partial(_rasterize_kernel, tri_block=tri_block, w=w,
                          rows_tile=rows_tile),
        out_shape=(plane(jnp.int32), plane(jnp.float32), plane(jnp.float32)),
        grid=(B, n_sp, n_chunks),
        in_specs=[
            # pixel-center planes, resident per spatial tile
            pl.BlockSpec((2, rows_tile, 128), lambda b, s, c: (0, s, 0)),
            # triangle chunk in SMEM (a few KiB, pipelined per grid step)
            pl.BlockSpec((1, 9, tri_block), lambda b, s, c: (b, 0, c),
                         memory_space=pltpu.MemorySpace.SMEM),
        ],
        out_specs=(out_spec, out_spec, out_spec),
        scratch_shapes=[pltpu.VMEM((rows_tile, 128), jnp.float32)],  # z-buffer
        compiler_params=pltpu.CompilerParams(
            dimension_semantics=("parallel", "parallel", "arbitrary"),
            vmem_limit_bytes=_VMEM_LIMIT),
    )(pxy, tri_ct)


# ----------------------------------------------------------------------------
# 3) fused interpolation + shading (full-vreg [C, rows, 128] blocks)
# ----------------------------------------------------------------------------
def _shade_kernel(light_ref, uvi_ref, nrm_ref, alb_ref, color_ref, alpha_ref,
                  *, mode, ambient_ratio):
    u = uvi_ref[0]                     # [R, 128]
    v = uvi_ref[1]
    mask = uvi_ref[2]                  # 1.0 covered, 0.0 background
    wgt = 1.0 - u - v

    nrm = nrm_ref[...].astype(jnp.float32)      # [9, R, 128], stored bf16
    normal = (u[None] * nrm[0:3] + v[None] * nrm[3:6] + wgt[None] * nrm[6:9])
    # re-normalize interpolated normal (reference renderer normalizes)
    inv_len = lax.rsqrt(jnp.sum(normal * normal, axis=0, keepdims=True) + 1e-12)
    normal = normal * inv_len * mask[None]

    albedo = alb_ref[...].astype(jnp.float32) * mask[None]

    if mode == 0:          # 'albedo'
        color = albedo
    elif mode == 1:        # 'normal'
        color = (normal + 1.0) * 0.5
    else:                  # lambertian (any other shading string)
        ndotl = (light_ref[0] * normal[0] + light_ref[1] * normal[1]
                 + light_ref[2] * normal[2])
        ndotl = jnp.maximum(ndotl, 0.0)
        color = albedo * (ambient_ratio + (1.0 - ambient_ratio) * ndotl)[None]

    # TODO(synk): dr.antialias (analytic silhouette AA) treated as identity.
    color_ref[...] = jnp.clip(color, 0.0, 1.0)
    alpha_ref[...] = jnp.clip(mask, 0.0, 1.0)[None]


def shade(light, uvi, nrm, alb, *, mode, ambient_ratio, rows_tile):
    B, _, rows_pad, _ = uvi.shape
    n_tiles = rows_pad // rows_tile
    kernel = functools.partial(_shade_kernel, mode=mode,
                               ambient_ratio=float(ambient_ratio))

    def spec(c):
        return pl.BlockSpec((None, c, rows_tile, 128),
                            lambda b, t: (b, 0, t, 0))

    return pl.pallas_call(
        kernel,
        out_shape=(jax.ShapeDtypeStruct((B, 3, rows_pad, 128), jnp.float32),
                   jax.ShapeDtypeStruct((B, 1, rows_pad, 128), jnp.float32)),
        grid=(B, n_tiles),
        in_specs=[pl.BlockSpec(memory_space=pltpu.MemorySpace.SMEM),
                  spec(3), spec(9), spec(3)],
        out_specs=(spec(3), spec(1)),
        compiler_params=pltpu.CompilerParams(
            dimension_semantics=("parallel", "parallel"),
            vmem_limit_bytes=_VMEM_LIMIT),
    )(light, uvi, nrm, alb)


# ----------------------------------------------------------------------------
# JAX glue
# ----------------------------------------------------------------------------
def _bilinear_sample(tex, uv):
    # tex: [Ht, Wt, 3], uv: [B, H, W, 2] in [0, 1]
    # TODO(synk): nvdiffrast 'linear-mipmap-linear' (trilinear mipmapping via
    # uv_da) not implemented; plain bilinear with clamped borders.
    Ht, Wt = tex.shape[:2]
    x = uv[..., 0] * Wt - 0.5
    y = uv[..., 1] * Ht - 0.5
    x0 = jnp.floor(x)
    y0 = jnp.floor(y)
    fx = (x - x0)[..., None]
    fy = (y - y0)[..., None]
    x0i = jnp.clip(x0.astype(jnp.int32), 0, Wt - 1)
    x1i = jnp.clip(x0i + 1, 0, Wt - 1)
    y0i = jnp.clip(y0.astype(jnp.int32), 0, Ht - 1)
    y1i = jnp.clip(y0i + 1, 0, Ht - 1)
    c00 = tex[y0i, x0i]
    c01 = tex[y0i, x1i]
    c10 = tex[y1i, x0i]
    c11 = tex[y1i, x1i]
    return (c00 * (1 - fx) * (1 - fy) + c01 * fx * (1 - fy)
            + c10 * (1 - fx) * fy + c11 * fx * fy)


def renderer_forward(mesh, mvp, h=16, w=16, light_d=None,
                     ambient_ratio=1.0, shading='albedo'):
    """Returns (color [B,H,W,3], alpha [B,H,W,1]) like Renderer.forward."""
    # TODO(synk): spp > 1 (supersampling + scale_img_nhwc) not implemented.
    B = mvp.shape[0]
    v, f = mesh['v'], mesh['f']
    vn, fn = mesh['vn'], mesh['fn']
    vt, ft = mesh['vt'], mesh['ft']
    albedo_tex = mesh['albedo']
    nv, nf = v.shape[0], f.shape[0]
    hw = h * w
    rows_pad, r_raster, r_shade = _plan_rows(hw)
    hw_pad = rows_pad * 128

    # ---- 1) vertex transform + projection (Pallas, VPU lane-dense) ----
    nvp = _round_up(nv, 128)
    v_lanes = jnp.zeros((3, nvp), jnp.float32).at[:, :nv].set(
        v.astype(jnp.float32).T)
    scr = vertex_transform(v_lanes, mvp.astype(jnp.float32), h, w)  # [B,3,Nvp]

    # ---- 2) triangle setup + pixel-center planes (glue) ----
    fi = f.reshape(-1)
    tri = scr[:, :, fi].reshape(B, 3, nf, 3)              # [B, coord, face, vert]
    tri = jnp.transpose(tri, (0, 2, 3, 1)).reshape(B, nf, 9)
    tri_ct = jnp.transpose(tri, (0, 2, 1))                # [B, 9, Nf]

    tri_block = nf if nf <= 512 else 512
    nf_pad = _round_up(nf, tri_block)
    if nf_pad > nf:
        tri_ct = jnp.pad(tri_ct, ((0, 0), (0, 0), (0, nf_pad - nf)))

    lin = jnp.arange(hw_pad, dtype=jnp.int32)
    px = (lin % w).astype(jnp.float32) + 0.5
    py = (lin // w).astype(jnp.float32) + 0.5
    pxy = jnp.stack([px, py], axis=0).reshape(2, rows_pad, 128)

    # ---- rasterize (Pallas): winning id + barycentrics per pixel ----
    id_pl, u_pl, v_pl = rasterize(tri_ct, pxy, w, tri_block, r_raster)
    rast_id = id_pl.reshape(B, hw_pad)[:, :hw]            # [B, HW] int32
    u_b = u_pl.reshape(B, hw_pad)[:, :hw]
    v_b = v_pl.reshape(B, hw_pad)[:, :hw]
    w_b = 1.0 - u_b - v_b
    mask = (rast_id > 0).astype(jnp.float32)
    tri_idx = jnp.clip(rast_id - 1, 0, nf - 1)

    # ---- 3) per-pixel attribute gathers + texture fetch (glue) ----
    # TODO(synk): these XLA gathers + bilinear fetch are the next candidate
    # for a scalar-prefetch / manual-DMA Pallas gather kernel.
    n_all = vn[fn[tri_idx]]                               # [B, HW, 3(vert), 3]
    t_all = vt[ft[tri_idx]]                               # [B, HW, 3(vert), 2]
    texc = (u_b[..., None] * t_all[:, :, 0, :]
            + v_b[..., None] * t_all[:, :, 1, :]
            + w_b[..., None] * t_all[:, :, 2, :])         # [B, HW, 2]
    alb = _bilinear_sample(albedo_tex, texc.reshape(B, h, w, 2))    # [B,H,W,3]

    # ---- 4) fused interpolation + shading (Pallas, full-vreg blocks) ----
    def to_planes(x, dtype):   # [B, C, HW] -> [B, C, rows_pad, 128]
        c = x.shape[1]
        if hw_pad > hw:
            x = jnp.pad(x, ((0, 0), (0, 0), (0, hw_pad - hw)))
        return x.reshape(B, c, rows_pad, 128).astype(dtype)

    uvi = to_planes(jnp.stack([u_b, v_b, mask], axis=1), jnp.float32)
    nrm = to_planes(jnp.transpose(n_all.reshape(B, hw, 9), (0, 2, 1)),
                    jnp.bfloat16)
    alb_p = to_planes(jnp.transpose(alb.reshape(B, hw, 3), (0, 2, 1)),
                      jnp.bfloat16)

    if light_d is None:
        light_d = jnp.array([0.0, 0.0, 1.0], jnp.float32)
    mode = {'albedo': 0, 'normal': 1}.get(shading, 2)

    color_c, alpha_c = shade(light_d.astype(jnp.float32), uvi, nrm, alb_p,
                             mode=mode, ambient_ratio=ambient_ratio,
                             rows_tile=r_shade)

    color = jnp.transpose(
        color_c.reshape(B, 3, hw_pad)[:, :, :hw].reshape(B, 3, h, w),
        (0, 2, 3, 1))
    alpha = jnp.transpose(
        alpha_c.reshape(B, 1, hw_pad)[:, :, :hw].reshape(B, 1, h, w),
        (0, 2, 3, 1))
    return color, alpha


# ----------------------------------------------------------------------------
# main
# ----------------------------------------------------------------------------
if __name__ == "__main__":
    key = jax.random.PRNGKey(0)
    k1, k2, k3, k4, k5, k6 = jax.random.split(key, 6)

    B, H, W = 2, 16, 16
    Nv, Nf = 8, 8
    Ht, Wt = 16, 16

    v_xy = jax.random.uniform(k1, (Nv, 2), jnp.float32, -0.8, 0.8)
    v_z = jax.random.uniform(k2, (Nv, 1), jnp.float32, 0.1, 0.9)
    v = jnp.concatenate([v_xy, v_z], axis=-1)                   # [Nv, 3]
    f = jax.random.randint(k3, (Nf, 3), 0, Nv, jnp.int32)       # [Nf, 3]
    vn = jax.random.normal(k4, (Nv, 3), jnp.float32)
    vn = vn / jnp.linalg.norm(vn, axis=-1, keepdims=True)
    vt = jax.random.uniform(k5, (Nv, 2), jnp.float32)
    albedo_tex = jax.random.uniform(k6, (Ht, Wt, 3), jnp.float32)

    mesh = dict(v=v, f=f, vn=vn, fn=f, vt=vt, ft=f, albedo=albedo_tex)

    mvp = jnp.tile(jnp.eye(4, dtype=jnp.float32)[None], (B, 1, 1))
    mvp = mvp.at[:, 0, 3].set(jnp.array([0.0, 0.1], jnp.float32))

    light_d = jnp.array([0.3, 0.4, 0.8], jnp.float32)
    light_d = light_d / jnp.linalg.norm(light_d)

    color, alpha = renderer_forward(mesh, mvp, h=H, w=W, light_d=light_d,
                                    ambient_ratio=0.5, shading='lambertian')
    jax.block_until_ready((color, alpha))

    assert color.shape == (B, H, W, 3), color.shape
    assert alpha.shape == (B, H, W, 1), alpha.shape
    assert bool(jnp.isfinite(color).all()) and bool(jnp.isfinite(alpha).all())
    print("KERNEL_OK")
</pallas_src>

<mosaic_0001>
module attributes {stable_mosaic.version = 11 : i64} {
  func.func @_vertex_kernel(%arg0: i32, %arg1: memref<2x4x4xf32, #tpu.memory_space<smem>>, %arg2: memref<3x128xf32, #tpu.memory_space<vmem>>, %arg3: memref<1x3x128xf32, #tpu.memory_space<vmem>>) attributes {dimension_semantics = [#tpu.dimension_semantics<parallel>], iteration_bounds = array<i64: 2>, scalar_prefetch = 0 : i64, scratch_operands = 0 : i64, tpu.core_type = #tpu.core_type<tc>, window_params = [{transform_indices = @transform_0, window_bounds = array<i64: 2, 4, 4>}, {pipeline_mode = #tpu.pipeline_mode<synchronous>, transform_indices = @transform_1, window_bounds = array<i64: 3, 128>}, {transform_indices = @transform_2, window_bounds = array<i64: 1, 3, 128>}]} {
    %c0 = arith.constant 0 : index
    %c0_0 = arith.constant 0 : index
    %0 = vector.load %arg2[%c0, %c0_0] : memref<3x128xf32, #tpu.memory_space<vmem>>, vector<1x128xf32>
    %c1 = arith.constant 1 : index
    %c0_1 = arith.constant 0 : index
    %1 = vector.load %arg2[%c1, %c0_1] : memref<3x128xf32, #tpu.memory_space<vmem>>, vector<1x128xf32>
    %c2 = arith.constant 2 : index
    %c0_2 = arith.constant 0 : index
    %2 = vector.load %arg2[%c2, %c0_2] : memref<3x128xf32, #tpu.memory_space<vmem>>, vector<1x128xf32>
    %3 = arith.index_cast %arg0 : i32 to index
    %c0_3 = arith.constant 0 : index
    %c0_4 = arith.constant 0 : index
    %4 = memref.load %arg1[%3, %c0_3, %c0_4] : memref<2x4x4xf32, #tpu.memory_space<smem>>
    %5 = vector.broadcast %4 : f32 to vector<1x128xf32>
    %6 = arith.mulf %5, %0 : vector<1x128xf32>
    %7 = arith.index_cast %arg0 : i32 to index
    %c0_5 = arith.constant 0 : index
    %c1_6 = arith.constant 1 : index
    %8 = memref.load %arg1[%7, %c0_5, %c1_6] : memref<2x4x4xf32, #tpu.memory_space<smem>>
    %9 = vector.broadcast %8 : f32 to vector<1x128xf32>
    %10 = arith.mulf %9, %1 : vector<1x128xf32>
    %11 = arith.addf %6, %10 : vector<1x128xf32>
    %12 = arith.index_cast %arg0 : i32 to index
    %c0_7 = arith.constant 0 : index
    %c2_8 = arith.constant 2 : index
    %13 = memref.load %arg1[%12, %c0_7, %c2_8] : memref<2x4x4xf32, #tpu.memory_space<smem>>
    %14 = vector.broadcast %13 : f32 to vector<1x128xf32>
    %15 = arith.mulf %14, %2 : vector<1x128xf32>
    %16 = arith.addf %11, %15 : vector<1x128xf32>
    %17 = arith.index_cast %arg0 : i32 to index
    %c0_9 = arith.constant 0 : index
    %c3 = arith.constant 3 : index
    %18 = memref.load %arg1[%17, %c0_9, %c3] : memref<2x4x4xf32, #tpu.memory_space<smem>>
    %19 = vector.broadcast %18 : f32 to vector<1x128xf32>
    %20 = arith.addf %16, %19 : vector<1x128xf32>
    %21 = arith.index_cast %arg0 : i32 to index
    %c1_10 = arith.constant 1 : index
    %c0_11 = arith.constant 0 : index
    %22 = memref.load %arg1[%21, %c1_10, %c0_11] : memref<2x4x4xf32, #tpu.memory_space<smem>>
    %23 = vector.broadcast %22 : f32 to vector<1x128xf32>
    %24 = arith.mulf %23, %0 : vector<1x128xf32>
    %25 = arith.index_cast %arg0 : i32 to index
    %c1_12 = arith.constant 1 : index
    %c1_13 = arith.constant 1 : index
    %26 = memref.load %arg1[%25, %c1_12, %c1_13] : memref<2x4x4xf32, #tpu.memory_space<smem>>
    %27 = vector.broadcast %26 : f32 to vector<1x128xf32>
    %28 = arith.mulf %27, %1 : vector<1x128xf32>
    %29 = arith.addf %24, %28 : vector<1x128xf32>
    %30 = arith.index_cast %arg0 : i32 to index
    %c1_14 = arith.constant 1 : index
    %c2_15 = arith.constant 2 : index
    %31 = memref.load %arg1[%30, %c1_14, %c2_15] : memref<2x4x4xf32, #tpu.memory_space<smem>>
    %32 = vector.broadcast %31 : f32 to vector<1x128xf32>
    %33 = arith.mulf %32, %2 : vector<1x128xf32>
    %34 = arith.addf %29, %33 : vector<1x128xf32>
    %35 = arith.index_cast %arg0 : i32 to index
    %c1_16 = arith.constant 1 : index
    %c3_17 = arith.constant 3 : index
    %36 = memref.load %arg1[%35, %c1_16, %c3_17] : memref<2x4x4xf32, #tpu.memory_space<smem>>
    %37 = vector.broadcast %36 : f32 to vector<1x128xf32>
    %38 = arith.addf %34, %37 : vector<1x128xf32>
    %39 = arith.index_cast %arg0 : i32 to index
    %c2_18 = arith.constant 2 : index
    %c0_19 = arith.constant 0 : index
    %40 = memref.load %arg1[%39, %c2_18, %c0_19] : memref<2x4x4xf32, #tpu.memory_space<smem>>
    %41 = vector.broadcast %40 : f32 to vector<1x128xf32>
    %42 = arith.mulf %41, %0 : vector<1x128xf32>
    %43 = arith.index_cast %arg0 : i32 to index
    %c2_20 = arith.constant 2 : index
    %c1_21 = arith.constant 1 : index
    %44 = memref.load %arg1[%43, %c2_20, %c1_21] : memref<2x4x4xf32, #tpu.memory_space<smem>>
    %45 = vector.broadcast %44 : f32 to vector<1x128xf32>
    %46 = arith.mulf %45, %1 : vector<1x128xf32>
    %47 = arith.addf %42, %46 : vector<1x128xf32>
    %48 = arith.index_cast %arg0 : i32 to index
    %c2_22 = arith.constant 2 : index
    %c2_23 = arith.constant 2 : index
    %49 = memref.load %arg1[%48, %c2_22, %c2_23] : memref<2x4x4xf32, #tpu.memory_space<smem>>
    %50 = vector.broadcast %49 : f32 to vector<1x128xf32>
    %51 = arith.mulf %50, %2 : vector<1x128xf32>
    %52 = arith.addf %47, %51 : vector<1x128xf32>
    %53 = arith.index_cast %arg0 : i32 to index
    %c2_24 = arith.constant 2 : index
    %c3_25 = arith.constant 3 : index
    %54 = memref.load %arg1[%53, %c2_24, %c3_25] : memref<2x4x4xf32, #tpu.memory_space<smem>>
    %55 = vector.broadcast %54 : f32 to vector<1x128xf32>
    %56 = arith.addf %52, %55 : vector<1x128xf32>
    %57 = arith.index_cast %arg0 : i32 to index
    %c3_26 = arith.constant 3 : index
    %c0_27 = arith.constant 0 : index
    %58 = memref.load %arg1[%57, %c3_26, %c0_27] : memref<2x4x4xf32, #tpu.memory_space<smem>>
    %59 = vector.broadcast %58 : f32 to vector<1x128xf32>
    %60 = arith.mulf %59, %0 : vector<1x128xf32>
    %61 = arith.index_cast %arg0 : i32 to index
    %c3_28 = arith.constant 3 : index
    %c1_29 = arith.constant 1 : index
    %62 = memref.load %arg1[%61, %c3_28, %c1_29] : memref<2x4x4xf32, #tpu.memory_space<smem>>
    %63 = vector.broadcast %62 : f32 to vector<1x128xf32>
    %64 = arith.mulf %63, %1 : vector<1x128xf32>
    %65 = arith.addf %60, %64 : vector<1x128xf32>
    %66 = arith.index_cast %arg0 : i32 to index
    %c3_30 = arith.constant 3 : index
    %c2_31 = arith.constant 2 : index
    %67 = memref.load %arg1[%66, %c3_30, %c2_31] : memref<2x4x4xf32, #tpu.memory_space<smem>>
    %68 = vector.broadcast %67 : f32 to vector<1x128xf32>
    %69 = arith.mulf %68, %2 : vector<1x128xf32>
    %70 = arith.addf %65, %69 : vector<1x128xf32>
    %71 = arith.index_cast %arg0 : i32 to index
    %c3_32 = arith.constant 3 : index
    %c3_33 = arith.constant 3 : index
    %72 = memref.load %arg1[%71, %c3_32, %c3_33] : memref<2x4x4xf32, #tpu.memory_space<smem>>
    %73 = vector.broadcast %72 : f32 to vector<1x128xf32>
    %74 = arith.addf %70, %73 : vector<1x128xf32>
    %75 = math.absf %74 : vector<1x128xf32>
    %cst = arith.constant 9.99999997E-7 : f32
    %76 = vector.broadcast %cst : f32 to vector<1x128xf32>
    %77 = arith.cmpf olt, %75, %76 : vector<1x128xf32>
    %cst_34 = arith.constant 0.000000e+00 : f32
    %78 = vector.broadcast %cst_34 : f32 to vector<1x128xf32>
    %79 = arith.cmpf olt, %74, %78 : vector<1x128xf32>
    %cst_35 = arith.constant -9.99999997E-7 : f32
    %cst_36 = arith.constant 9.99999997E-7 : f32
    %80 = vector.broadcast %cst_35 : f32 to vector<1x128xf32>
    %81 = vector.broadcast %cst_36 : f32 to vector<1x128xf32>
    %82 = arith.select %79, %80, %81 : vector<1x128xi1>, vector<1x128xf32>
    %83 = arith.select %77, %82, %74 : vector<1x128xi1>, vector<1x128xf32>
    %84 = tpu.reciprocal %83 {approx = true} : vector<1x128xf32> -> vector<1x128xf32>
    %85 = arith.mulf %20, %84 : vector<1x128xf32>
    %cst_37 = arith.constant 5.000000e-01 : f32
    %86 = vector.broadcast %cst_37 : f32 to vector<1x128xf32>
    %87 = arith.mulf %85, %86 : vector<1x128xf32>
    %cst_38 = arith.constant 5.000000e-01 : f32
    %88 = vector.broadcast %cst_38 : f32 to vector<1x128xf32>
    %89 = arith.addf %87, %88 : vector<1x128xf32>
    %cst_39 = arith.constant 1.600000e+01 : f32
    %90 = vector.broadcast %cst_39 : f32 to vector<1x128xf32>
    %91 = arith.mulf %89, %90 : vector<1x128xf32>
    %c0_40 = arith.constant 0 : index
    %c0_41 = arith.constant 0 : index
    %c0_42 = arith.constant 0 : index
    %92 = vector.load %arg3[%c0_40, %c0_41, %c0_42] : memref<1x3x128xf32, #tpu.memory_space<vmem>>, vector<1x1x128xf32>
    %93 = vector.shape_cast %92 : vector<1x1x128xf32> to vector<1x128xf32>
    %94 = vector.shape_cast %91 : vector<1x128xf32> to vector<1x1x128xf32>
    tpu.vector_store %arg3[%c0_40, %c0_41, %c0_42], %94 {strides = array<i32>} : memref<1x3x128xf32, #tpu.memory_space<vmem>>, vector<1x1x128xf32>,
    %95 = arith.mulf %38, %84 : vector<1x128xf32>
    %cst_43 = arith.constant 5.000000e-01 : f32
    %96 = vector.broadcast %cst_43 : f32 to vector<1x128xf32>
    %97 = arith.mulf %95, %96 : vector<1x128xf32>
    %cst_44 = arith.constant 5.000000e-01 : f32
    %98 = vector.broadcast %cst_44 : f32 to vector<1x128xf32>
    %99 = arith.addf %97, %98 : vector<1x128xf32>
    %cst_45 = arith.constant 1.600000e+01 : f32
    %100 = vector.broadcast %cst_45 : f32 to vector<1x128xf32>
    %101 = arith.mulf %99, %100 : vector<1x128xf32>
    %c0_46 = arith.constant 0 : index
    %c1_47 = arith.constant 1 : index
    %c0_48 = arith.constant 0 : index
    %102 = vector.load %arg3[%c0_46, %c1_47, %c0_48] : memref<1x3x128xf32, #tpu.memory_space<vmem>>, vector<1x1x128xf32>
    %103 = vector.shape_cast %102 : vector<1x1x128xf32> to vector<1x128xf32>
    %104 = vector.shape_cast %101 : vector<1x128xf32> to vector<1x1x128xf32>
    tpu.vector_store %arg3[%c0_46, %c1_47, %c0_48], %104 {strides = array<i32>} : memref<1x3x128xf32, #tpu.memory_space<vmem>>, vector<1x1x128xf32>,
    %105 = arith.mulf %56, %84 : vector<1x128xf32>
    %c0_49 = arith.constant 0 : index
    %c2_50 = arith.constant 2 : index
    %c0_51 = arith.constant 0 : index
    %106 = vector.load %arg3[%c0_49, %c2_50, %c0_51] : memref<1x3x128xf32, #tpu.memory_space<vmem>>, vector<1x1x128xf32>
    %107 = vector.shape_cast %106 : vector<1x1x128xf32> to vector<1x128xf32>
    %108 = vector.shape_cast %105 : vector<1x128xf32> to vector<1x1x128xf32>
    tpu.vector_store %arg3[%c0_49, %c2_50, %c0_51], %108 {strides = array<i32>} : memref<1x3x128xf32, #tpu.memory_space<vmem>>, vector<1x1x128xf32>,
    return
  }
  func.func @transform_0(%arg0: i32) -> (i32, i32, i32) {
    %c0_i32 = arith.constant 0 : i32
    %c0_i32_0 = arith.constant 0 : i32
    %c0_i32_1 = arith.constant 0 : i32
    %c0_i32_2 = arith.constant 0 : i32
    return %c0_i32, %c0_i32_0, %c0_i32_1 : i32, i32, i32
  }
  func.func @transform_1(%arg0: i32) -> (i32, i32) {
    %c0_i32 = arith.constant 0 : i32
    %c0_i32_0 = arith.constant 0 : i32
    %c0_i32_1 = arith.constant 0 : i32
    return %c0_i32, %c0_i32_0 : i32, i32
  }
  func.func @transform_2(%arg0: i32) -> (i32, i32, i32) {
    %c0_i32 = arith.constant 0 : i32
    %c0_i32_0 = arith.constant 0 : i32
    %c0_i32_1 = arith.constant 0 : i32
    return %arg0, %c0_i32, %c0_i32_0 : i32, i32, i32
  }
}

</mosaic_0001>

<bundles_post_ra>
// kernel: tpu_custom_call.1
= control target key start
LH: loop header
LB: loop body
LE: loop exit
PB: predicated region body
PF: predicated region fallthrough
CT: control target
= control target key end

     0   :  { %7 = vsyncpa [#allocation4], 0  ;;  %s584_s0 = inlined_call_operand.hbm [shape: f32[2,4,4], index: 0, kind: input, shape index: {}]   ;;  %s585_s1 = inlined_call_operand.hbm [shape: f32[3,128], index: 1, kind: input, shape index: {}]   ;;  %s586_s2 = inlined_call_operand.vmem [shape: f32[2,3,128], index: 2, kind: output, shape index: {}]  }
   0x1   :  { %8 = vsyncpa [#allocation3], 0  ;;  %s448_s9 = smov 0  }
   0x2 LB: > { %s454_s10 = sadd.s32 4294967295, %s426_s9   ;;  %p313_p0 = scmp.ge.s32.totalorder %s426_s9, 1  ;;  %s426_s9 = sphi %s448_s9, %s14_s9  }
   0x3   : > { %p87_p1 = scmp.lt.s32.totalorder %s426_s9, 3  ;;  %p352_p2 = scmp.eq.s32.totalorder %s454_s10, 0 }
   0x4   : > { %s428_s12 = smov [#allocation5]   ;;  %s371_s17 = scalar_lea.hbm %s584_s0, 128 }
   0x5   : > { %p459_p3 = pnand %p313_p0, %p87_p1  ;;  %s111_s13 = sshll.u32 %s428_s12, 4  ;;  %s471_s13 = int_to_ptr.vmem [resolvable:$true] %s111_s13 }
   0x6   : > { %p372_p6 = scmp.ne.s32.totalorder %s584_s0, %s371_s17  ;;  %p378_p10 = scmp.lt.u32.totalorder %s371_s17, %s584_s0 }
   0x7   : > { %p345_p4 = pneg %p459_p3 }
   0x9   : > { %p467_p5 = pnand %p352_p2, %p345_p4 }
   0xb   : > { %p373_p7 = pneg %p467_p5 }
   0xd   : > { %p374_p8 = pnand %p373_p7, %p372_p6 }
   0xf   : > { %p375_p9 = pneg %p374_p8 }
  0x11   : > { %p380_p11 = pnand %p378_p10, %p375_p9 }
  0x13   : > { %383 = shalt.err (!%p380_p11)
}
  0x14   : > { %s429_s22 = smov [#allocation2]   ;;  %s430_s23 = smov 64  }
  0x15   : > { %s431_s24 = smov 4   ;;  %s384_s29 = scalar_lea.hbm %s585_s1, 64 }
  0x16   : > { %348 = dma.hbm_to_smem (!%p467_p5), %s584_s0, 128, %s429_s22, [#allocation4], %s430_s23, %s430_s23, %s431_s24  }
  0x17   : > { %p385_p12 = scmp.ne.s32.totalorder %s585_s1, %s384_s29  ;;  %p391_p1 = scmp.lt.u32.totalorder %s384_s29, %s585_s1 }
  0x19   : > { %p387_p13 = pnand %p385_p12, %p373_p7 }
  0x1b   : > { %p388_p0 = pneg %p387_p13 }
  0x1d   : > { %p393_p4 = pnand %p391_p1, %p388_p0 }
  0x1f   : > { %396 = shalt.err (!%p393_p4)
}
  0x20   : > { %s397_s6 = scalar_lea.vmem %s471_s13, 64  ;;  %p405_p10 = scmp.lt.s32.totalorder %s471_s13, %s471_s13 }
  0x21   : > { %p398_p6 = scmp.ne.s32.totalorder %s471_s13, %s397_s6  ;;  %p406_p11 = scmp.lt.s32.totalorder %s397_s6, %s397_s6 }
  0x23   : > { %p400_p8 = pnand %p398_p6, %p373_p7  ;;  %p407_p12 = por %p406_p11, %p405_p10 }
  0x25   : > { %p401_p9 = pneg %p400_p8 }
  0x27   : > { %p408_p13 = pnand %p407_p12, %p401_p9 }
  0x29   : > { %411 = shalt.err (!%p408_p13)
}
  0x2a   : > { %351 = dma.hbm_to_vmem [thread:$0]  (!%p467_p5), %s585_s1, 64, %s471_s13, [#allocation3]  }
  0x2b   : > { %124 = sbr.rel (%p459_p3) target bundleno = 99 (0x63), region = 28 }
  0x32   : > { %417 = dma.done.wait (%p352_p2), [#allocation4], 128  }
  0x33   : > { %419 = vsyncadd (%p352_p2), [#allocation4], 4294967168 }
  0x34   : > { %421 = dma.done.wait (%p352_p2), [#allocation3], 64  }
  0x35   : > { %423 = vsyncadd (%p352_p2), [#allocation3], 4294967232 }
  0x36   : > { %134 = sfence }
  0x37   : > { %s528_s12 = sshll.u32 %s454_s10, 9  ;;  %v149_v0 = vld [vmem:[#allocation5] sm:$0x1]  ;;  %v150_v1 = vld [vmem:[#allocation5 + $0x1] sm:$0x1]  ;;  %p145_p2 = scmp.lt.s32.totalorder %s454_s10, 1 }
  0x38   : > { %s157_s11 = sadd.s32 1, %s528_s12  ;;  %s532_s13 = sld [smem:[#allocation2 + %s528_s12]]  ;;  %v151_v2 = vld [vmem:[#allocation5 + $0x2] sm:$0x1]  ;;  %v432_v28 = vmov 1e-06  }
  0x39   : > { %s534_s14 = sld [smem:[#allocation2 + %s157_s11]]  ;;  %s162_s15 = sadd.s32 2, %s528_s12 }
  0x3a   : > { %s333_s16 = sadd.s32 384, %s528_s12  ;;  %s541_s24 = sadd.s32 128, %s528_s12 }
  0x3b   : > { %s211_s17 = sld [smem:[#allocation2 + %s333_s16]]  ;;  %s214_s18 = sadd.s32 1, %s333_s16 }
  0x3c   : > { %s215_s19 = sld [smem:[#allocation2 + %s214_s18]]  ;;  %s219_s20 = sadd.s32 2, %s333_s16 }
  0x3d   : > { %s220_s21 = sld [smem:[#allocation2 + %s219_s20]]  ;;  %s224_s22 = sadd.s32 3, %s333_s16 }
  0x3e   : > { %s538_s23 = sld [smem:[#allocation2 + %s224_s22]]  ;;  %s176_s26 = sadd.s32 1, %s541_s24  ;;  %v155_v9 = vstv %s532_s13 }
  0x3f   : > { %s544_s25 = sld [smem:[#allocation2 + %s541_s24]]  ;;  %s181_s28 = sadd.s32 2, %s541_s24  ;;  %v159_v10 = vstv %s534_s14  ;;  %v156_v16 = vmul.f32 %v155_v9, %v149_v0 }
  0x40   : > { %s547_s27 = sld [smem:[#allocation2 + %s176_s26]]  ;;  %s555_s3 = sadd.s32 256, %s528_s12  ;;  %v160_v17 = vmul.f32 %v159_v10, %v150_v1 }
  0x41   : > { %s550_s29 = sld [smem:[#allocation2 + %s162_s15]]  ;;  %v212_v3 = vstv %s211_s17  ;;  %s195_s5 = sadd.s32 1, %s555_s3 }
  0x42   : > { %v213_v4 = vmul.f32 %v212_v3, %v149_v0  ;;  %v216_v5 = vstv %s215_s19  ;;  %s552_s30 = sld [smem:[#allocation2 + %s181_s28]]  ;;  %s200_s7 = sadd.s32 2, %s555_s3  ;;  %v161_v31 = vadd.f32 %v160_v17, %v156_v16 }
  0x43   : > { %v217_v6 = vmul.f32 %v216_v5, %v150_v1  ;;  %v221_v7 = vstv %s220_s21  ;;  %s192_s4 = sld [smem:[#allocation2 + %s555_s3]]  ;;  %s167_s11 = sadd.s32 3, %s528_s12 }
  0x44   : > { %v222_v8 = vmul.f32 %v221_v7, %v151_v2  ;;  %s196_s6 = sld [smem:[#allocation2 + %s195_s5]]  ;;  %v226_v12 = vstv %s538_s23  ;;  %s186_s15 = sadd.s32 3, %s541_s24 }
  0x45   : > { %v218_v11 = vadd.f32 %v217_v6, %v213_v4  ;;  %s562_s8 = sld [smem:[#allocation2 + %s200_s7]]  ;;  %v174_v13 = vstv %s544_s25  ;;  %s205_s16 = sadd.s32 3, %s555_s3 }
  0x46   : > { %v178_v15 = vstv %s547_s27  ;;  %v175_v20 = vmul.f32 %v174_v13, %v149_v0  ;;  %s571_s13 = sld [smem:[#allocation2 + %s167_s11]]  ;;  %s590_s10 = smov (!%p145_p2, %s454_s10), 1 }
  0x47   : > { %v223_v14 = vadd.f32 %v222_v8, %v218_v11  ;;  %v164_v18 = vstv %s550_s29  ;;  %v179_v22 = vmul.f32 %v178_v15, %v150_v1  ;;  %s187_s12 = sld [smem:[#allocation2 + %s186_s15]]  ;;  %s319_s17 = sshll.u32 %s590_s10, 2 }
  0x48   : > { %v183_v23 = vstv %s552_s30  ;;  %s206_s14 = sld [smem:[#allocation2 + %s205_s16]]  ;;  %v165_v32 = vmul.f32 %v164_v18, %v151_v2  ;;  %s148_s20 = scalar_lea.vmem %s586_s2, %s319_s17 }
  0x49   : > { %v227_v19 = vadd.f32 %v226_v12, %v223_v14  ;;  %v193_v21 = vstv %s192_s4  ;;  %v184_v33 = vmul.f32 %v183_v23, %v151_v2  ;;  %v180_v35 = vadd.f32 %v179_v22, %v175_v20 }
  0x4a   : > { %v194_v24 = vmul.f32 %v193_v21, %v149_v0  ;;  %v197_v25 = vstv %s196_s6  ;;  %v166_v38 = vadd.f32 %v165_v32, %v161_v31 }
  0x4b   : > { %v228_v26 = vand.u32 2147483647, %v227_v19  ;;  %vm230_vm0 = vcmp.lt.f32.partialorder %v227_v19, 0.0  ;;  %v198_v27 = vmul.f32 %v197_v25, %v150_v1  ;;  %v202_v30 = vstv %s562_s8 }
  0x4c   : > { %v231_v29 = vsel %vm230_vm0, -1e-06, %v432_v28  ;;  %v203_v37 = vmul.f32 %v202_v30, %v151_v2  ;;  %v185_v39 = vadd.f32 %v184_v33, %v180_v35  ;;  %v169_v41 = vstv %s571_s13 }
  0x4d   : > { %vm229_vm1 = vcmp.lt.f32.partialorder %v228_v26, 1e-06  ;;  %v199_v36 = vadd.f32 %v198_v27, %v194_v24  ;;  %v188_v42 = vstv %s187_s12  ;;  %v170_v44 = vadd.f32 %v169_v41, %v166_v38 }
  0x4e   : > { %v232_v34 = vsel %vm229_vm1, %v231_v29, %v227_v19  ;;  %v207_v43 = vstv %s206_s14  ;;  %v189_v45 = vadd.f32 %v188_v42, %v185_v39 }
  0x4f   : > { %369 = vrcp.f32 %v232_v34  ;;  %v204_v40 = vadd.f32 %v203_v37, %v199_v36 }
  0x51   : > { %v208_v46 = vadd.f32 %v207_v43, %v204_v40 }
  0x59   : > { %v370_v47 = vpop.eup %369 }
  0x5a   : > { %v234_v48 = vmul.f32 %v370_v47, %v170_v44  ;;  %v239_v49 = vmul.f32 %v370_v47, %v189_v45  ;;  %v244_v50 = vmul.f32 %v370_v47, %v208_v46 }
  0x5c   : > { %v235_v51 = vmul.f32 0.5, %v234_v48  ;;  %v240_v52 = vmul.f32 0.5, %v239_v49  ;;  %245 = vst [vmem:[%s148_s20 + $0x2] sm:$0x1] %v244_v50 }
  0x5e   : > { %v236_v53 = vadd.f32 0.5, %v235_v51  ;;  %v241_v54 = vadd.f32 0.5, %v240_v52 }
  0x60   : > { %v237_v55 = vmul.f32 16.0, %v236_v53  ;;  %v242_v56 = vmul.f32 16.0, %v241_v54 }
  0x62   : > { %238 = vst [vmem:[%s148_s20] sm:$0x1] %v237_v55  ;;  %243 = vst [vmem:[%s148_s20 + $0x1] sm:$0x1] %v242_v56 }
  0x63 PF: > { %s14_s9 = sadd.s32 1, %s426_s9  }
  0x64   : > { %p11_p3 = scmp.ge.s32.totalorder %s14_s9, 4  }
  0x66   :  { %13 = sbr.rel (!%p11_p3) target bundleno = 2 (0x2), region = 65 }
  0x6d   :  { %265 = vsyncpa [#allocation3], 1 }
  0x6e   :  { %267 = vsyncpa [#allocation3 + $0x1], 1 }
  0x6f   :  { %268 = vsyncpa [#allocation4], 1 }
  0x70   :  { %270 = vsyncpa [#allocation4 + $0x1], 1 }

</bundles_post_ra>
